<compile_context>
chip_gen: v5e
topology: v5e:2x2
jax: 0.10.0
libtpu: 0.0.40
codegen_flags: <defaults>
</compile_context>

<pallas_src>
import jax
import jax.numpy as jnp
from jax.experimental import pallas as pl
from jax.experimental.pallas import tpu as pltpu


def _exchange_kernel(thr_ref, bn1_ref, bn2_ref, x0_ref, x1_ref, o1_ref, o2_ref):
    thr = thr_ref[0, 0]                              # scalar threshold (SMEM)
    m1 = (jnp.abs(bn1_ref[...]) >= thr)[None]        # (1, tc, 1) bool, broadcast along lanes
    m2 = (jnp.abs(bn2_ref[...]) >= thr)[None]        # (1, tc, 1)
    x0 = x0_ref[...]                                 # (1, tc, tm)
    x1 = x1_ref[...]                                 # (1, tc, tm)
    o1_ref[...] = jnp.where(m1, x0, x1)
    o2_ref[...] = jnp.where(m2, x1, x0)


def _pick_tile(full_dim, unit, target):
    """Largest multiple of `unit` that divides `full_dim` and is <= target; else the full dim.

    Keeps every block shape either a clean (8,128)-aligned tile or the full array extent,
    so the TPU tiling constraint is always satisfied with no partial blocks.
    """
    if full_dim % unit != 0 or full_dim <= unit:
        return full_dim
    best = unit
    t = unit
    limit = min(target, full_dim)
    while t <= limit:
        if full_dim % t == 0:
            best = t
        t += unit
    return best


def exchange(x0, x1, bn1_weight, bn2_weight, bn_threshold,
             *, target_tc=128, target_tm=2048):
    """x0, x1: (N, C, H, W); bn*_weight: (C,); bn_threshold: scalar."""
    N, C, H, W = x0.shape
    M = H * W
    dtype = x0.dtype

    # Free, contiguous reshapes only — no transposes around the kernel.
    x0_r = x0.reshape(N, C, M)
    x1_r = x1.reshape(N, C, M)
    bn1 = bn1_weight.reshape(C, 1).astype(jnp.float32)
    bn2 = bn2_weight.reshape(C, 1).astype(jnp.float32)
    thr = jnp.asarray(bn_threshold, jnp.float32).reshape(1, 1)

    # Tile budget: <= ~1 MiB f32 per pipelined buffer (8 live buffers) — fits the
    # smallest default scoped VMEM (v5e 16 MiB) and v7x's 64 MiB physical VMEM.
    tc = _pick_tile(C, 8, target_tc)      # sublane tile (multiple of 8, or full C)
    tm = _pick_tile(M, 128, target_tm)    # lane tile (multiple of 128, or full H*W)
    grid = (N, C // tc, M // tm)

    data_spec = pl.BlockSpec((1, tc, tm), lambda n, ci, mi: (n, ci, mi))
    bn_spec = pl.BlockSpec((tc, 1), lambda n, ci, mi: (ci, 0))

    out1_r, out2_r = pl.pallas_call(
        _exchange_kernel,
        out_shape=(
            jax.ShapeDtypeStruct((N, C, M), dtype),
            jax.ShapeDtypeStruct((N, C, M), dtype),
        ),
        grid=grid,
        in_specs=[
            pl.BlockSpec(memory_space=pltpu.MemorySpace.SMEM),   # threshold scalar
            bn_spec,                                             # bn1 gamma slice (tc, 1)
            bn_spec,                                             # bn2 gamma slice (tc, 1)
            data_spec,                                           # x0 tile
            data_spec,                                           # x1 tile
        ],
        out_specs=(data_spec, data_spec),
        compiler_params=pltpu.CompilerParams(
            dimension_semantics=("parallel", "parallel", "parallel"),
        ),
    )(thr, bn1, bn2, x0_r, x1_r)

    return [out1_r.reshape(N, C, H, W), out2_r.reshape(N, C, H, W)]


def _reference(x0, x1, bn1_weight, bn2_weight, thr):
    m1 = (jnp.abs(bn1_weight) >= thr)[None, :, None, None]
    m2 = (jnp.abs(bn2_weight) >= thr)[None, :, None, None]
    return [jnp.where(m1, x0, x1), jnp.where(m2, x1, x0)]


if __name__ == "__main__":
    key = jax.random.PRNGKey(0)
    k0, k1, k2, k3 = jax.random.split(key, 4)

    N, C, H, W = 2, 4, 16, 16
    x0 = jax.random.normal(k0, (N, C, H, W), dtype=jnp.float32)
    x1 = jax.random.normal(k1, (N, C, H, W), dtype=jnp.float32)

    # Deterministic synthetic BatchNorm gammas (the module's bn[0].weight / bn[1].weight)
    bn1_weight = jax.random.normal(k2, (C,), dtype=jnp.float32)
    bn2_weight = jax.random.normal(k3, (C,), dtype=jnp.float32)
    bn_threshold = 0.5

    out = exchange(x0, x1, bn1_weight, bn2_weight, bn_threshold)
    jax.block_until_ready(out)

    ref = _reference(x0, x1, bn1_weight, bn2_weight, bn_threshold)
    assert jnp.allclose(out[0], ref[0]) and jnp.allclose(out[1], ref[1])

    print("KERNEL_OK")
</pallas_src>

<mosaic_0001>
module attributes {stable_mosaic.version = 11 : i64} {
  func.func @_exchange_kernel(%arg0: i32, %arg1: i32, %arg2: i32, %arg3: memref<1x1xf32, #tpu.memory_space<smem>>, %arg4: memref<4x1xf32, #tpu.memory_space<vmem>>, %arg5: memref<4x1xf32, #tpu.memory_space<vmem>>, %arg6: memref<1x4x256xf32, #tpu.memory_space<vmem>>, %arg7: memref<1x4x256xf32, #tpu.memory_space<vmem>>, %arg8: memref<1x4x256xf32, #tpu.memory_space<vmem>>, %arg9: memref<1x4x256xf32, #tpu.memory_space<vmem>>) attributes {dimension_semantics = [#tpu.dimension_semantics<parallel>, #tpu.dimension_semantics<parallel>, #tpu.dimension_semantics<parallel>], iteration_bounds = array<i64: 2, 1, 1>, scalar_prefetch = 0 : i64, scratch_operands = 0 : i64, tpu.core_type = #tpu.core_type<tc>, window_params = [{transform_indices = @transform_0, window_bounds = array<i64: 1, 1>}, {transform_indices = @transform_1, window_bounds = array<i64: 4, 1>}, {transform_indices = @transform_2, window_bounds = array<i64: 4, 1>}, {transform_indices = @transform_3, window_bounds = array<i64: 1, 4, 256>}, {transform_indices = @transform_4, window_bounds = array<i64: 1, 4, 256>}, {transform_indices = @transform_5, window_bounds = array<i64: 1, 4, 256>}, {transform_indices = @transform_6, window_bounds = array<i64: 1, 4, 256>}]} {
    %c0 = arith.constant 0 : index
    %c0_0 = arith.constant 0 : index
    %0 = memref.load %arg3[%c0, %c0_0] : memref<1x1xf32, #tpu.memory_space<smem>>
    %c0_1 = arith.constant 0 : index
    %c0_2 = arith.constant 0 : index
    %1 = vector.load %arg4[%c0_1, %c0_2] : memref<4x1xf32, #tpu.memory_space<vmem>>, vector<4x1xf32>
    %2 = math.absf %1 : vector<4x1xf32>
    %3 = vector.broadcast %0 : f32 to vector<4x1xf32>
    %4 = arith.cmpf oge, %2, %3 : vector<4x1xf32>
    %5 = vector.shape_cast %4 : vector<4x1xi1> to vector<1x4x1xi1>
    %c0_3 = arith.constant 0 : index
    %c0_4 = arith.constant 0 : index
    %6 = vector.load %arg5[%c0_3, %c0_4] : memref<4x1xf32, #tpu.memory_space<vmem>>, vector<4x1xf32>
    %7 = math.absf %6 : vector<4x1xf32>
    %8 = vector.broadcast %0 : f32 to vector<4x1xf32>
    %9 = arith.cmpf oge, %7, %8 : vector<4x1xf32>
    %10 = vector.shape_cast %9 : vector<4x1xi1> to vector<1x4x1xi1>
    %c0_5 = arith.constant 0 : index
    %c0_6 = arith.constant 0 : index
    %c0_7 = arith.constant 0 : index
    %11 = vector.load %arg6[%c0_5, %c0_6, %c0_7] : memref<1x4x256xf32, #tpu.memory_space<vmem>>, vector<1x4x256xf32>
    %c0_8 = arith.constant 0 : index
    %c0_9 = arith.constant 0 : index
    %c0_10 = arith.constant 0 : index
    %12 = vector.load %arg7[%c0_8, %c0_9, %c0_10] : memref<1x4x256xf32, #tpu.memory_space<vmem>>, vector<1x4x256xf32>
    %13 = vector.shape_cast %5 : vector<1x4x1xi1> to vector<1x4x1xi1>
    %14 = vector.broadcast %13 : vector<1x4x1xi1> to vector<1x4x256xi1>
    %15 = arith.select %14, %11, %12 : vector<1x4x256xi1>, vector<1x4x256xf32>
    %c0_11 = arith.constant 0 : index
    %c0_12 = arith.constant 0 : index
    %c0_13 = arith.constant 0 : index
    %16 = vector.load %arg8[%c0_11, %c0_12, %c0_13] : memref<1x4x256xf32, #tpu.memory_space<vmem>>, vector<1x4x256xf32>
    tpu.vector_store %arg8[%c0_11, %c0_12, %c0_13], %15 {strides = array<i32>} : memref<1x4x256xf32, #tpu.memory_space<vmem>>, vector<1x4x256xf32>,
    %17 = vector.shape_cast %10 : vector<1x4x1xi1> to vector<1x4x1xi1>
    %18 = vector.broadcast %17 : vector<1x4x1xi1> to vector<1x4x256xi1>
    %19 = arith.select %18, %12, %11 : vector<1x4x256xi1>, vector<1x4x256xf32>
    %c0_14 = arith.constant 0 : index
    %c0_15 = arith.constant 0 : index
    %c0_16 = arith.constant 0 : index
    %20 = vector.load %arg9[%c0_14, %c0_15, %c0_16] : memref<1x4x256xf32, #tpu.memory_space<vmem>>, vector<1x4x256xf32>
    tpu.vector_store %arg9[%c0_14, %c0_15, %c0_16], %19 {strides = array<i32>} : memref<1x4x256xf32, #tpu.memory_space<vmem>>, vector<1x4x256xf32>,
    return
  }
  func.func @transform_0(%arg0: i32, %arg1: i32, %arg2: i32) -> (i32, i32) {
    %c0_i32 = arith.constant 0 : i32
    %c0_i32_0 = arith.constant 0 : i32
    %c0_i32_1 = arith.constant 0 : i32
    return %c0_i32, %c0_i32_0 : i32, i32
  }
  func.func @transform_1(%arg0: i32, %arg1: i32, %arg2: i32) -> (i32, i32) {
    %c0_i32 = arith.constant 0 : i32
    %c0_i32_0 = arith.constant 0 : i32
    return %arg1, %c0_i32 : i32, i32
  }
  func.func @transform_2(%arg0: i32, %arg1: i32, %arg2: i32) -> (i32, i32) {
    %c0_i32 = arith.constant 0 : i32
    %c0_i32_0 = arith.constant 0 : i32
    return %arg1, %c0_i32 : i32, i32
  }
  func.func @transform_3(%arg0: i32, %arg1: i32, %arg2: i32) -> (i32, i32, i32) {
    %c0_i32 = arith.constant 0 : i32
    return %arg0, %arg1, %arg2 : i32, i32, i32
  }
  func.func @transform_4(%arg0: i32, %arg1: i32, %arg2: i32) -> (i32, i32, i32) {
    %c0_i32 = arith.constant 0 : i32
    return %arg0, %arg1, %arg2 : i32, i32, i32
  }
  func.func @transform_5(%arg0: i32, %arg1: i32, %arg2: i32) -> (i32, i32, i32) {
    %c0_i32 = arith.constant 0 : i32
    return %arg0, %arg1, %arg2 : i32, i32, i32
  }
  func.func @transform_6(%arg0: i32, %arg1: i32, %arg2: i32) -> (i32, i32, i32) {
    %c0_i32 = arith.constant 0 : i32
    return %arg0, %arg1, %arg2 : i32, i32, i32
  }
}

</mosaic_0001>

<bundles_post_ra>
// kernel: tpu_custom_call.1
= control target key start
LH: loop header
LB: loop body
LE: loop exit
PB: predicated region body
PF: predicated region fallthrough
CT: control target
= control target key end

     0   :  { %s1172_s0 = inlined_call_operand.<no memory space> [shape: f32[1,1], index: 0, kind: input, shape index: {}]   ;;  %s1173_s1 = inlined_call_operand.vmem [shape: f32[4,1], index: 1, kind: input, shape index: {}]   ;;  %s1174_s2 = inlined_call_operand.vmem [shape: f32[4,1], index: 2, kind: input, shape index: {}]   ;;  %s1175_s3 = inlined_call_operand.hbm [shape: f32[2,4,256], index: 3, kind: input, shape index: {}]   ;;  %s1176_s4 = inlined_call_operand.hbm [shape: f32[2,4,256], index: 4, kind: input, shape index: {}]   ;;  %s1177_s5 = inlined_call_operand.hbm [shape: f32[2,4,256], index: 5, kind: output, shape index: {0}]   ;;  %s1178_s6 = inlined_call_operand.hbm [shape: f32[2,4,256], index: 6, kind: output, shape index: {1}]  }
   0x1   :  { %12 = sst [smem:[#allocation2]] %s1172_s0 }
   0x2   :  { %13 = vsyncpa [#allocation4], 0 }
   0x3   :  { %15 = vsyncpa [#allocation4 + $0x1], 0 }
   0x4   :  { %16 = vsyncpa [#allocation7], 0 }
   0x5   :  { %18 = vsyncpa [#allocation7 + $0x1], 0 }
   0x6   :  { %19 = vsyncpa [#allocation5], 0 }
   0x7   :  { %21 = vsyncpa [#allocation5 + $0x1], 0 }
   0x8   :  { %22 = vsyncpa [#allocation10], 0 }
   0x9   :  { %24 = vsyncpa [#allocation10 + $0x1], 0  ;;  %s1016_s23 = smov 0   ;;  %s1018_s24 = smov 0  }
   0xa   :  { %s1020_s25 = smov 0   ;;  %s1022_s26 = smov 0  }
   0xb   :  { %s1024_s27 = smov 0   ;;  %s1026_s28 = smov 0  }
   0xc LB: > { %1181 = sst [smem:[#allocation15_spill]] %s971_s27  ;;  %s694_s0 = sadd.s32 4294967295, %s975_s28   ;;  %s975_s28 = sphi %s1026_s28, %s30_s28   ;;  %s971_s27 = sphi %s1024_s27, %s1188_s27   ;;  %s967_s26 = sphi %s1022_s26, %s1187_s26   ;;  %s963_s25 = sphi %s1020_s25, %s1191_s25   ;;  %s959_s24 = sphi %s1018_s24, %s1190_s24   ;;  %s955_s23 = sphi %s1016_s23, %s1189_s23  }
   0xd   : > { %s695_s29 = sadd.s32 4294967294, %s975_s28   ;;  %s49_s30 = sadd.s32 1, %s971_s27 }
   0xe   : > { %s133_s7 = sadd.s32 1, %s963_s25  ;;  %p51_p0 = scmp.ge.s32.totalorder %s49_s30, 2 }
   0xf   : > { %p140_p1 = scmp.ne.s32.totalorder %s963_s25, %s959_s24  ;;  %p141_p2 = scmp.eq.s32.totalorder %s975_s28, 0 }
  0x10   : > { %p146_p3 = scmp.ne.s32.totalorder %s959_s24, %s955_s23  ;;  %s1193_s30 = smov (%p51_p0, %s49_s30), 0 }
  0x11   : > { %1182 = sst [smem:[#allocation16_spill]] %s1193_s30  ;;  %p1057_p4 = por %p141_p2, %p140_p1 }
  0x12   : > { %p147_p5 = scmp.eq.s32.totalorder %s694_s0, 0  ;;  %s126_s9 = ssub.s32 %s971_s27, %s1193_s30 }
  0x13   : > { %p204_p6 = scmp.eq.s32.totalorder %s694_s0, 1  ;;  %p131_p7 = scmp.eq.s32.totalorder %s126_s9, 0 }
  0x14   : > { %p1063_p8 = por %p147_p5, %p146_p3  ;;  %p210_p10 = scmp.eq.s32.totalorder %s695_s29, 1 }
  0x15   : > { %p1067_p9 = por %p204_p6, %p140_p1  ;;  %p699_p12 = scmp.ge.s32.totalorder %s975_s28, 2 }
  0x16   : > { %s1072_s12 = scalar_select %p131_p7, %s963_s25, %s133_s7  }
  0x17   : > { %p1074_p11 = por %p210_p10, %p146_p3  ;;  %p745_p13 = scmp.lt.s32.totalorder %s975_s28, 2 }
  0x18   : > { %s277_s14 = sand.u32 1, %s963_s25   ;;  %s719_s16 = sshll.u32 %s971_s27, 3 }
  0x19   : > { %s700_s15 = sshll.u32 %s277_s14, 3  ;;  %s290_s19 = scalar_lea.hbm %s1175_s3, %s719_s16 }
  0x1a   : > { %s281_s20 = scalar_lea.vmem [#allocation3], %s700_s15  ;;  %s292_s22 = sshll.u32 %s290_s19, 4  ;;  %s293_s22 = int_to_ptr.hbm [resolvable:$true] %s292_s22 }
  0x1b   : > { %s294_s21 = sshll.u32 %s281_s20, 4  ;;  %p732_p0 = pnand %p745_p13, %p1057_p4  ;;  %s295_s21 = int_to_ptr.vmem [resolvable:$true] %s294_s21 }
  0x1c   : > { %p706_p1 = scmp.ge.s32.totalorder %s975_s28, 1  ;;  %p323_p2 = scmp.lt.s32.totalorder %s975_s28, 3 }
  0x1d   : > { %s278_s0 = scalar_lea.sflag [#allocation4], %s277_s14  ;;  %s314_s9 = scalar_lea.hbm %s1176_s4, %s719_s16 }
  0x1e   : > { %734 = dma.hbm_to_vmem [thread:$0]  (!%p732_p0), %s293_s22, 128, %s295_s21, %s278_s0  }
  0x1f   : > { %p324_p3 = pnand %p706_p1, %p323_p2  ;;  %s305_s30 = scalar_lea.vmem [#allocation6], %s700_s15 }
  0x20   : > { %s318_s27 = sshll.u32 %s305_s30, 4  ;;  %s316_s17 = sshll.u32 %s314_s9, 4  ;;  %s319_s27 = int_to_ptr.vmem [resolvable:$true] %s318_s27  ;;  %s317_s17 = int_to_ptr.hbm [resolvable:$true] %s316_s17 }
  0x21   : > { %s302_s18 = scalar_lea.sflag [#allocation7], %s277_s14  ;;  %327 = sbr.rel (%p324_p3) target bundleno = 187 (0xbb), region = 40 }
  0x22   : > { %737 = dma.hbm_to_vmem [thread:$0]  (!%p732_p0), %s317_s17, 128, %s319_s27, %s302_s18  }
  0x23   : > { %s1093_s8 = sand.u32 (!%p324_p3), 1, %s959_s24  }
  0x24   : > { %s1096_s19 = sshll.u32 (!%p324_p3), %s1093_s8, 3  ;;  %s330_s20 = scalar_lea.sflag (!%p324_p3), [#allocation4], %s1093_s8 }
  0x25   : > { %s333_s21 = scalar_lea.vmem (!%p324_p3), [#allocation3], %s1096_s19 }
  0x26   : > { %938 = dma.done.wait (%p1063_p8), %s330_s20, 128  }
  0x27   : > { %940 = vsyncadd (%p1063_p8), %s330_s20, 4294967168  ;;  %s340_s27 = scalar_lea.sflag [#allocation7], %s1093_s8  ;;  %s343_s30 = scalar_lea.vmem [#allocation6], %s1096_s19 }
  0x28   : > { %942 = dma.done.wait (%p1063_p8), %s340_s27, 128  }
  0x29   : > { %944 = vsyncadd (%p1063_p8), %s340_s27, 4294967168  ;;  %v977_v0 = vmov 0   ;;  %s403_s14 = sld [smem:[#allocation2]]  ;;  %v404_v1 = vld [vmem:[%s1173_s1] sm:$0xf]  ;;  %v411_v4 = vld [vmem:[%s333_s21] sm:$0xff] }
  0x2a   : > { %796 = vset.pattern.permute.xlu0 %v977_v0  ;;  %v408_v3 = vld [vmem:[%s1174_s2] sm:$0xf]  ;;  %v405_v5 = vand.u32 2147483647, %v404_v1  ;;  %419 = vst [vmem:[#allocation1] ss:$2 sm:$0xff] %v411_v4 }
  0x2b   : > { %v409_v6 = vand.u32 2147483647, %v408_v3  ;;  %v412_v8 = vld [vmem:[%s343_s30] sm:$0xff]  ;;  %s721_s10 = sshll.u32 %s967_s26, 3  ;;  %s383_s17 = scalar_lea.vmem [#allocation8], %s1096_s19  ;;  %vm435_vm3 = vcmask 1043456  }
  0x2c   : > { %s483_s9 = scalar_lea.hbm %s1177_s5, %s721_s10  ;;  %s485_s18 = sshll.u32 %s383_s17, 4  ;;  %s486_s18 = int_to_ptr.vmem [resolvable:$true] %s485_s18 }
  0x2d   : > { %s487_s20 = sshll.u32 %s483_s9, 4  ;;  %s502_s27 = scalar_lea.hbm %s1178_s6, %s721_s10  ;;  %s488_s20 = int_to_ptr.hbm [resolvable:$true] %s487_s20 }
  0x2e   : > { %s463_s30 = scalar_lea.sflag [#allocation5], %s1093_s8  ;;  %s877_s0 = scalar_lea.hbm %s1177_s5, 16 }
  0x2f   : > { %v406_v2 = vstv %s403_s14  ;;  %s871_s14 = sshra.s32 %s488_s20, 4  ;;  %s872_s14 = int_to_ptr.hbm [resolvable:$true] %s871_s14 }
  0x30   : > { %vm407_vm0 = vcmp.ge.f32.partialorder %v405_v5, %v406_v2  ;;  %vm410_vm1 = vcmp.ge.f32.partialorder %v409_v6, %v406_v2  ;;  %s873_s15 = scalar_lea.hbm %s872_s14, 8  ;;  %p878_p7 = scmp.lt.s32.totalorder %s872_s14, %s1177_s5 }
  0x31   : > { %v413_v7 = vsel %vm407_vm0, 1, %v977_v0  ;;  %v420_v9 = vld.sshfl [vmem:[#allocation1] sm:$0xff pattern:$0x75316420]  ;;  %v439_v11 = vsel %vm410_vm1, 1, %v977_v0  ;;  %p874_p4 = scmp.ne.s32.totalorder %s872_s14, %s873_s15  ;;  %p879_p8 = scmp.lt.s32.totalorder %s877_s0, %s873_s15 }
  0x32   : > { %415 = vperm.xlu0 %796, %v413_v7   ;;  %v421_v10 = vld.sshfl [vmem:[#allocation1 + $0x8] sm:$0xff pattern:$0x75316420] }
  0x33   : > { %425 = vst [vmem:[#allocation1] ss:$2 sm:$0xff] %v412_v8  ;;  %p875_p5 = pnand %p874_p4, %p1067_p9  ;;  %p880_p10 = por %p879_p8, %p878_p7 }
  0x35   : > { %p876_p6 = pneg %p875_p5 }
  0x37   : > { %p881_p13 = pnand %p880_p10, %p876_p6 }
  0x3a   : > { %441 = vperm.xlu0 %796, %v439_v11   ;;  %v426_v12 = vld.sshfl [vmem:[#allocation1] sm:$0xff pattern:$0x75316420]  ;;  %v427_v13 = vld.sshfl [vmem:[#allocation1 + $0x8] sm:$0xff pattern:$0x75316420] }
  0x3b   : > { %444 = vst [vmem:[#allocation1] ss:$2 sm:$0xff] %v412_v8 }
  0x42   : > { %v445_v14 = vld.sshfl [vmem:[#allocation1] sm:$0xff pattern:$0x75316420]  ;;  %v446_v15 = vld.sshfl [vmem:[#allocation1 + $0x8] sm:$0xff pattern:$0x75316420] }
  0x43   : > { %449 = vst [vmem:[#allocation1] ss:$2 sm:$0xff] %v411_v4 }
  0x4a   : > { %v451_v21 = vld.sshfl [vmem:[#allocation1 + $0x8] sm:$0xff pattern:$0x75316420] }
  0xa4   : > { %v416_v16 = vpop.permute.xlu0 %415 }
  0xa5   : > { %vm417_vm2 = vcmp.eq.s32.totalorder %v416_v16, 1 }
  0xa6   : > { %v431_v17 = vsel %vm417_vm2, %v421_v10, %v427_v13  ;;  %v430_v19 = vsel %vm417_vm2, %v420_v9, %v426_v12 }
  0xa7   : > { %v434_v18 = vrot.slane %v431_v17, 4 }
  0xa9   : > { %v436_v20 = vsel %vm435_vm3, %v430_v19, %v434_v18 }
  0xaa   : > { %438 = vst [vmem:[%s383_s17] sm:$0xff] %v436_v20 }
  0xab   : > { %884 = shalt.err (!%p881_p13)
}
  0xac   : > { %727 = dma.vmem_to_hbm [thread:$0]  (%p1067_p9), %s486_s18, 128, %s488_s20, %s463_s30   ;;  %v442_v22 = vpop.permute.xlu0 %441  ;;  %v450_v23 = vld.sshfl [vmem:[#allocation1] sm:$0xff pattern:$0x75316420] }
  0xad   : > { %vm443_vm4 = vcmp.eq.s32.totalorder %v442_v22, 1  ;;  %s390_s10 = scalar_lea.vmem [#allocation9], %s1096_s19  ;;  %s506_s17 = sshll.u32 %s502_s27, 4  ;;  %s507_s17 = int_to_ptr.hbm [resolvable:$true] %s506_s17 }
  0xae   : > { %s504_s9 = sshll.u32 %s390_s10, 4  ;;  %v455_v24 = vsel %vm443_vm4, %v446_v15, %v451_v21  ;;  %v454_v26 = vsel %vm443_vm4, %v445_v14, %v450_v23  ;;  %s468_s26 = scalar_lea.sflag [#allocation10], %s1093_s8  ;;  %s505_s9 = int_to_ptr.vmem [resolvable:$true] %s504_s9 }
  0xaf   : > { %v458_v25 = vrot.slane %v455_v24, 4  ;;  %s899_s21 = sshra.s32 %s507_s17, 4  ;;  %s905_s20 = scalar_lea.hbm %s1178_s6, 16  ;;  %s900_s21 = int_to_ptr.hbm [resolvable:$true] %s899_s21 }
  0xb0   : > { %s901_s14 = scalar_lea.hbm %s900_s21, 8  ;;  %p906_p3 = scmp.lt.s32.totalorder %s900_s21, %s1178_s6 }
  0xb1   : > { %v459_v27 = vsel %vm435_vm3, %v454_v26, %v458_v25  ;;  %p902_p0 = scmp.ne.s32.totalorder %s900_s21, %s901_s14  ;;  %p907_p4 = scmp.lt.s32.totalorder %s905_s20, %s901_s14 }
  0xb2   : > { %461 = vst [vmem:[%s390_s10] sm:$0xff] %v459_v27 }
  0xb3   : > { %p903_p1 = pnand %p902_p0, %p1067_p9  ;;  %p908_p5 = por %p907_p4, %p906_p3 }
  0xb5   : > { %p904_p2 = pneg %p903_p1 }
  0xb7   : > { %p909_p6 = pnand %p908_p5, %p904_p2 }
  0xb9   : > { %912 = shalt.err (!%p909_p6)
}
  0xba   : > { %728 = dma.vmem_to_hbm [thread:$0]  (%p1067_p9), %s505_s9, 128, %s507_s17, %s468_s26  }
  0xbb PF: > { %s518_s8 = sand.u32 1, %s955_s23   ;;  %p739_p7 = pnand %p699_p12, %p1074_p11 }
  0xbc   : > { %s519_s15 = scalar_lea.sflag [#allocation5], %s518_s8 }
  0xbd   : > { %p740_p8 = pneg %p739_p7 }
  0xbf   : > { %946 = dma.done.wait (%p740_p8), %s519_s15, 128  }
  0xc0   : > { %948 = vsyncadd (%p740_p8), %s519_s15, 4294967168  ;;  %s529_s16 = scalar_lea.sflag [#allocation10], %s518_s8 }
  0xc1   : > { %950 = dma.done.wait (%p740_p8), %s529_s16, 128  }
  0xc2   : > { %952 = vsyncadd (%p740_p8), %s529_s16, 4294967168  ;;  %s30_s28 = sadd.s32 1, %s975_s28   ;;  %s1187_s26 = sld [smem:[#allocation15_spill]] }
  0xc3   : > { %p27_p10 = scmp.ge.s32.totalorder %s30_s28, 4   ;;  %s1188_s27 = sld [smem:[#allocation16_spill]] }
  0xc4   : > { %s1189_s23 = smov %s959_s24  ;;  %s1190_s24 = smov %s963_s25 }
  0xc5   : > { %s1191_s25 = smov %s1072_s12  ;;  %29 = sbr.rel (!%p27_p10) target bundleno = 12 (0xc), region = 121 }
  0xca   :  { %535 = vsyncpa [#allocation4], 1 }
  0xcb   :  { %537 = vsyncpa [#allocation4 + $0x1], 1 }
  0xcc   :  { %538 = vsyncpa [#allocation7], 1 }
  0xcd   :  { %540 = vsyncpa [#allocation7 + $0x1], 1 }
  0xce   :  { %541 = vsyncpa [#allocation5], 1 }
  0xcf   :  { %543 = vsyncpa [#allocation5 + $0x1], 1 }
  0xd0   :  { %544 = vsyncpa [#allocation10], 1 }
  0xd1   :  { %546 = vsyncpa [#allocation10 + $0x1], 1 }

</bundles_post_ra>
